<compile_context>
chip_gen: v5e
topology: v5e:2x2
jax: 0.10.0
libtpu: 0.0.40
codegen_flags: <defaults>
</compile_context>

<pallas_src>
import jax
import jax.numpy as jnp
from jax.experimental import pallas as pl
from jax.experimental.pallas import tpu as pltpu


def _round_up(n, m):
    return ((n + m - 1) // m) * m


def mlp_kernel(x_ref, w1_ref, b1_ref, w2_ref, b2_ref, w3_ref, b3_ref, o_ref):
    # linear1 + relu   (bf16 matmul, f32 accumulate / bias / relu)
    x = x_ref[...].astype(w1_ref.dtype)
    h1 = jnp.dot(x, w1_ref[...], preferred_element_type=jnp.float32) + b1_ref[...]
    h1 = jnp.maximum(h1, 0.0)
    # linear2 + relu
    h2 = jnp.dot(h1.astype(w2_ref.dtype), w2_ref[...],
                 preferred_element_type=jnp.float32) + b2_ref[...]
    h2 = jnp.maximum(h2, 0.0)
    # dropout: identity in eval mode.
    # linear3 (output lanes padded to 128 -> unmasked, lane-dense store)
    o_ref[...] = jnp.dot(h2.astype(w3_ref.dtype), w3_ref[...],
                         preferred_element_type=jnp.float32) + b3_ref[...]


def prepare_params(params, weight_dtype=jnp.bfloat16):
    """One-time layout prep (do NOT call per forward pass):
    transpose torch (out,in) weights to (in,out), cast to bf16, reshape biases
    to (1,n) f32, and zero-pad the last layer to a 128-multiple output width."""
    out_size = params["w3"].shape[0]
    out_pad = _round_up(out_size, 128)

    w3_t = params["w3"].T.astype(weight_dtype)                       # (h2, out)
    w3_t = jnp.pad(w3_t, ((0, 0), (0, out_pad - out_size)))          # (h2, out_pad)
    b3 = jnp.pad(params["b3"], ((0, out_pad - out_size),)).reshape(1, -1)

    return {
        "w1": params["w1"].T.astype(weight_dtype),                   # (in, h1)
        "b1": params["b1"].reshape(1, -1).astype(jnp.float32),       # (1, h1)
        "w2": params["w2"].T.astype(weight_dtype),                   # (h1, h2)
        "b2": params["b2"].reshape(1, -1).astype(jnp.float32),       # (1, h2)
        "w3": w3_t,                                                  # (h2, out_pad) bf16
        "b3": b3.astype(jnp.float32),                                # (1, out_pad)
        "out_size": out_size,                                        # python int
    }


def mlp_forward(x, prep, *, batch_tile=512):
    """x: (B, input_size) f32. prep: output of prepare_params()."""
    B, in_size = x.shape
    out_pad = prep["w3"].shape[1]
    out_size = prep["out_size"]

    # Batch tiling: TB is a multiple of 8 sublanes; pad B up to a TB multiple.
    TB = min(batch_tile, _round_up(B, 8))
    Bp = _round_up(B, TB)
    if Bp != B:
        x = jnp.pad(x, ((0, Bp - B), (0, 0)))
    grid = (Bp // TB,)

    def full_block(arr):
        return pl.BlockSpec(arr.shape, lambda i: (0, 0))

    out = pl.pallas_call(
        mlp_kernel,
        out_shape=jax.ShapeDtypeStruct((Bp, out_pad), jnp.float32),
        grid=grid,
        in_specs=[
            pl.BlockSpec((TB, in_size), lambda i: (i, 0)),   # x: batch-tiled
            full_block(prep["w1"]),
            full_block(prep["b1"]),
            full_block(prep["w2"]),
            full_block(prep["b2"]),
            full_block(prep["w3"]),
            full_block(prep["b3"]),
        ],
        out_specs=pl.BlockSpec((TB, out_pad), lambda i: (i, 0)),
        compiler_params=pltpu.CompilerParams(
            dimension_semantics=("parallel",),   # shard batch tiles across TCs (v7x)
        ),
    )(x, prep["w1"], prep["b1"], prep["w2"], prep["b2"], prep["w3"], prep["b3"])

    return out[:B, :out_size]


def init_params(key, input_size, hidden1, hidden2, output_size):
    """Deterministic synthetic init mimicking nn.Linear parameter shapes (torch layout)."""
    ks = jax.random.split(key, 6)

    def uinit(k, shape, fan_in):
        bound = 1.0 / jnp.sqrt(fan_in)
        return jax.random.uniform(k, shape, jnp.float32, -bound, bound)

    return {
        "w1": uinit(ks[0], (hidden1, input_size), input_size),
        "b1": uinit(ks[1], (hidden1,), input_size),
        "w2": uinit(ks[2], (hidden2, hidden1), hidden1),
        "b2": uinit(ks[3], (hidden2,), hidden1),
        "w3": uinit(ks[4], (output_size, hidden2), hidden2),
        "b3": uinit(ks[5], (output_size,), hidden2),
    }


def mlp_reference(x, params, weight_dtype=jnp.bfloat16):
    """Reference with the same bf16-weight / f32-accumulate numerics as the kernel."""
    def lin(h, w, b):
        return jnp.dot(h.astype(weight_dtype), w.T.astype(weight_dtype),
                       preferred_element_type=jnp.float32) + b
    h1 = jnp.maximum(lin(x, params["w1"], params["b1"]), 0.0)
    h2 = jnp.maximum(lin(h1, params["w2"], params["b2"]), 0.0)
    return lin(h2, params["w3"], params["b3"])


if __name__ == "__main__":
    # BipedalWalker MLP-ish sizes, kept small.
    batch, input_size, hidden1, hidden2, output_size = 2, 24, 32, 32, 4

    key = jax.random.PRNGKey(0)
    kx, kp = jax.random.split(key)
    x = jax.random.normal(kx, (batch, input_size), jnp.float32)
    params = init_params(kp, input_size, hidden1, hidden2, output_size)

    # One-time layout prep (transpose / bf16 / pad) hoisted out of the call path.
    prep = prepare_params(params)

    fwd = jax.jit(lambda xb: mlp_forward(xb, prep))
    out = jax.block_until_ready(fwd(x))
    ref = mlp_reference(x, params)
    assert out.shape == (batch, output_size)
    assert jnp.allclose(out, ref, atol=1e-3, rtol=1e-3)

    # Exercise the batch-tiled grid path (row padding + multi-step parallel grid).
    xb = jax.random.normal(kx, (300, input_size), jnp.float32)
    fwd_big = jax.jit(lambda xv: mlp_forward(xv, prep, batch_tile=128))
    out_big = jax.block_until_ready(fwd_big(xb))
    ref_big = mlp_reference(xb, params)
    assert out_big.shape == (300, output_size)
    assert jnp.allclose(out_big, ref_big, atol=1e-3, rtol=1e-3)

    print("KERNEL_OK")
</pallas_src>

<mosaic_0001>
module attributes {stable_mosaic.version = 11 : i64} {
  func.func @mlp_kernel(%arg0: i32, %arg1: memref<8x24xf32, #tpu.memory_space<vmem>>, %arg2: memref<24x32xbf16, #tpu.memory_space<vmem>>, %arg3: memref<1x32xf32, #tpu.memory_space<vmem>>, %arg4: memref<32x32xbf16, #tpu.memory_space<vmem>>, %arg5: memref<1x32xf32, #tpu.memory_space<vmem>>, %arg6: memref<32x128xbf16, #tpu.memory_space<vmem>>, %arg7: memref<1x128xf32, #tpu.memory_space<vmem>>, %arg8: memref<8x128xf32, #tpu.memory_space<vmem>>) attributes {dimension_semantics = [#tpu.dimension_semantics<parallel>], iteration_bounds = array<i64: 1>, scalar_prefetch = 0 : i64, scratch_operands = 0 : i64, tpu.core_type = #tpu.core_type<tc>, window_params = [{transform_indices = @transform_0, window_bounds = array<i64: 8, 24>}, {pipeline_mode = #tpu.pipeline_mode<synchronous>, transform_indices = @transform_1, window_bounds = array<i64: 24, 32>}, {pipeline_mode = #tpu.pipeline_mode<synchronous>, transform_indices = @transform_2, window_bounds = array<i64: 1, 32>}, {pipeline_mode = #tpu.pipeline_mode<synchronous>, transform_indices = @transform_3, window_bounds = array<i64: 32, 32>}, {pipeline_mode = #tpu.pipeline_mode<synchronous>, transform_indices = @transform_4, window_bounds = array<i64: 1, 32>}, {pipeline_mode = #tpu.pipeline_mode<synchronous>, transform_indices = @transform_5, window_bounds = array<i64: 32, 128>}, {pipeline_mode = #tpu.pipeline_mode<synchronous>, transform_indices = @transform_6, window_bounds = array<i64: 1, 128>}, {transform_indices = @transform_7, window_bounds = array<i64: 8, 128>}]} {
    %c0 = arith.constant 0 : index
    %c0_0 = arith.constant 0 : index
    %0 = vector.load %arg1[%c0, %c0_0] : memref<8x24xf32, #tpu.memory_space<vmem>>, vector<8x24xf32>
    %1 = arith.truncf %0 : vector<8x24xf32> to vector<8x24xbf16>
    %c0_1 = arith.constant 0 : index
    %c0_2 = arith.constant 0 : index
    %2 = vector.load %arg2[%c0_1, %c0_2] : memref<24x32xbf16, #tpu.memory_space<vmem>>, vector<24x32xbf16>
    %cst = arith.constant dense<0.000000e+00> : vector<8x32xf32>
    %3 = tpu.matmul %1, %2, %cst {dimension_numbers = #tpu.dot_dimension_numbers<[1], [0], [0], [1], [0, 0, 1, 1], [], []>} : vector<8x24xbf16>, vector<24x32xbf16>, vector<8x32xf32> -> vector<8x32xf32>
    %c0_3 = arith.constant 0 : index
    %c0_4 = arith.constant 0 : index
    %4 = vector.load %arg3[%c0_3, %c0_4] : memref<1x32xf32, #tpu.memory_space<vmem>>, vector<1x32xf32>
    %5 = vector.broadcast %4 : vector<1x32xf32> to vector<8x32xf32>
    %6 = arith.addf %3, %5 : vector<8x32xf32>
    %cst_5 = arith.constant 0.000000e+00 : f32
    %7 = vector.broadcast %cst_5 : f32 to vector<8x32xf32>
    %8 = arith.maximumf %6, %7 : vector<8x32xf32>
    %9 = arith.truncf %8 : vector<8x32xf32> to vector<8x32xbf16>
    %c0_6 = arith.constant 0 : index
    %c0_7 = arith.constant 0 : index
    %10 = vector.load %arg4[%c0_6, %c0_7] : memref<32x32xbf16, #tpu.memory_space<vmem>>, vector<32x32xbf16>
    %cst_8 = arith.constant dense<0.000000e+00> : vector<8x32xf32>
    %11 = tpu.matmul %9, %10, %cst_8 {dimension_numbers = #tpu.dot_dimension_numbers<[1], [0], [0], [1], [0, 0, 1, 1], [], []>} : vector<8x32xbf16>, vector<32x32xbf16>, vector<8x32xf32> -> vector<8x32xf32>
    %c0_9 = arith.constant 0 : index
    %c0_10 = arith.constant 0 : index
    %12 = vector.load %arg5[%c0_9, %c0_10] : memref<1x32xf32, #tpu.memory_space<vmem>>, vector<1x32xf32>
    %13 = vector.broadcast %12 : vector<1x32xf32> to vector<8x32xf32>
    %14 = arith.addf %11, %13 : vector<8x32xf32>
    %cst_11 = arith.constant 0.000000e+00 : f32
    %15 = vector.broadcast %cst_11 : f32 to vector<8x32xf32>
    %16 = arith.maximumf %14, %15 : vector<8x32xf32>
    %17 = arith.truncf %16 : vector<8x32xf32> to vector<8x32xbf16>
    %c0_12 = arith.constant 0 : index
    %c0_13 = arith.constant 0 : index
    %18 = vector.load %arg6[%c0_12, %c0_13] : memref<32x128xbf16, #tpu.memory_space<vmem>>, vector<32x128xbf16>
    %cst_14 = arith.constant dense<0.000000e+00> : vector<8x128xf32>
    %19 = tpu.matmul %17, %18, %cst_14 {dimension_numbers = #tpu.dot_dimension_numbers<[1], [0], [0], [1], [0, 0, 1, 1], [], []>} : vector<8x32xbf16>, vector<32x128xbf16>, vector<8x128xf32> -> vector<8x128xf32>
    %c0_15 = arith.constant 0 : index
    %c0_16 = arith.constant 0 : index
    %20 = vector.load %arg7[%c0_15, %c0_16] : memref<1x128xf32, #tpu.memory_space<vmem>>, vector<1x128xf32>
    %21 = vector.broadcast %20 : vector<1x128xf32> to vector<8x128xf32>
    %22 = arith.addf %19, %21 : vector<8x128xf32>
    %c0_17 = arith.constant 0 : index
    %c0_18 = arith.constant 0 : index
    %23 = vector.load %arg8[%c0_17, %c0_18] : memref<8x128xf32, #tpu.memory_space<vmem>>, vector<8x128xf32>
    tpu.vector_store %arg8[%c0_17, %c0_18], %22 {strides = array<i32>} : memref<8x128xf32, #tpu.memory_space<vmem>>, vector<8x128xf32>,
    return
  }
  func.func @transform_0(%arg0: i32) -> (i32, i32) {
    %c0_i32 = arith.constant 0 : i32
    %c0_i32_0 = arith.constant 0 : i32
    return %arg0, %c0_i32 : i32, i32
  }
  func.func @transform_1(%arg0: i32) -> (i32, i32) {
    %c0_i32 = arith.constant 0 : i32
    %c0_i32_0 = arith.constant 0 : i32
    %c0_i32_1 = arith.constant 0 : i32
    return %c0_i32, %c0_i32_0 : i32, i32
  }
  func.func @transform_2(%arg0: i32) -> (i32, i32) {
    %c0_i32 = arith.constant 0 : i32
    %c0_i32_0 = arith.constant 0 : i32
    %c0_i32_1 = arith.constant 0 : i32
    return %c0_i32, %c0_i32_0 : i32, i32
  }
  func.func @transform_3(%arg0: i32) -> (i32, i32) {
    %c0_i32 = arith.constant 0 : i32
    %c0_i32_0 = arith.constant 0 : i32
    %c0_i32_1 = arith.constant 0 : i32
    return %c0_i32, %c0_i32_0 : i32, i32
  }
  func.func @transform_4(%arg0: i32) -> (i32, i32) {
    %c0_i32 = arith.constant 0 : i32
    %c0_i32_0 = arith.constant 0 : i32
    %c0_i32_1 = arith.constant 0 : i32
    return %c0_i32, %c0_i32_0 : i32, i32
  }
  func.func @transform_5(%arg0: i32) -> (i32, i32) {
    %c0_i32 = arith.constant 0 : i32
    %c0_i32_0 = arith.constant 0 : i32
    %c0_i32_1 = arith.constant 0 : i32
    return %c0_i32, %c0_i32_0 : i32, i32
  }
  func.func @transform_6(%arg0: i32) -> (i32, i32) {
    %c0_i32 = arith.constant 0 : i32
    %c0_i32_0 = arith.constant 0 : i32
    %c0_i32_1 = arith.constant 0 : i32
    return %c0_i32, %c0_i32_0 : i32, i32
  }
  func.func @transform_7(%arg0: i32) -> (i32, i32) {
    %c0_i32 = arith.constant 0 : i32
    %c0_i32_0 = arith.constant 0 : i32
    return %arg0, %c0_i32 : i32, i32
  }
}

</mosaic_0001>

<bundles_post_ra>
// kernel: _lambda_.1
= control target key start
LH: loop header
LB: loop body
LE: loop exit
PB: predicated region body
PF: predicated region fallthrough
CT: control target
= control target key end

     0   :  { %12 = vsyncpa [#allocation3], 0  ;;  %s378_s0 = inlined_call_operand.vmem [shape: f32[8,24], index: 0, kind: input, shape index: {}]   ;;  %s379_s1 = inlined_call_operand.hbm [shape: bf16[24,32], index: 1, kind: input, shape index: {}]   ;;  %s380_s2 = inlined_call_operand.vmem [shape: f32[1,32], index: 2, kind: input, shape index: {}]   ;;  %s381_s3 = inlined_call_operand.hbm [shape: bf16[32,32], index: 3, kind: input, shape index: {}]   ;;  %s382_s4 = inlined_call_operand.vmem [shape: f32[1,32], index: 4, kind: input, shape index: {}]   ;;  %s383_s5 = inlined_call_operand.hbm [shape: bf16[32,128], index: 5, kind: input, shape index: {}]   ;;  %s384_s6 = inlined_call_operand.vmem [shape: f32[1,128], index: 6, kind: input, shape index: {}]   ;;  %s385_s7 = inlined_call_operand.vmem [shape: f32[8,128], index: 7, kind: output, shape index: {}]  }
   0x1   :  { %13 = vsyncpa [#allocation5], 0  ;;  %s35_s26 = sshll.u32 %s381_s3, 4  ;;  %s309_s27 = smov [#allocation4]   ;;  %s36_s26 = int_to_ptr.hbm [resolvable:$true] %s35_s26 }
   0x2   :  { %s37_s28 = sshll.u32 %s309_s27, 4  ;;  %s20_s8 = sshll.u32 %s379_s1, 4  ;;  %s38_s28 = int_to_ptr.vmem [resolvable:$true] %s37_s28  ;;  %s21_s8 = int_to_ptr.hbm [resolvable:$true] %s20_s8 }
   0x3   :  { %s310_s9 = smov 64   ;;  %s311_s10 = smov 4  }
   0x4   :  { %43 = dma.hbm_to_vmem [thread:$0]  %s36_s26, 256, %s38_s28, [#allocation5], %s310_s9, %s310_s9, %s311_s10  }
   0x5   :  { %s312_s11 = smov [#allocation2]   ;;  %s50_s15 = sshll.u32 %s383_s5, 4  ;;  %s51_s15 = int_to_ptr.hbm [resolvable:$true] %s50_s15 }
   0x6   :  { %s22_s12 = sshll.u32 %s312_s11, 4  ;;  %s313_s3 = smov [#allocation6]   ;;  %s23_s12 = int_to_ptr.vmem [resolvable:$true] %s22_s12 }
   0x7   :  { %28 = dma.hbm_to_vmem [thread:$0]  %s21_s8, 192, %s23_s12, [#allocation3], %s310_s9, %s310_s9, %s311_s10  }
   0x8   :  { %s52_s16 = sshll.u32 %s313_s3, 4  ;;  %s53_s16 = int_to_ptr.vmem [resolvable:$true] %s52_s16 }
   0x9   :  { %58 = dma.hbm_to_vmem [thread:$0]  %s51_s15, 256, %s53_s16, [#allocation5], %s310_s9, %s310_s9, %s311_s10  }
   0xa   :  { %305 = dma.done.wait [#allocation3], 192  }
   0xb   :  { %306 = vsyncadd [#allocation3], 4294967104 }
   0xc   :  { %307 = dma.done.wait [#allocation5], 512  }
   0xd   :  { %308 = vsyncadd [#allocation5], 4294966784  ;;  %v78_v0 = vld [vmem:[#allocation2 + $0x8] sm:$0xf]  ;;  %vm96_vm0 = vcmask 1043456   ;;  %v220_v4 = vld [vmem:[#allocation2] sm:$0xff] }
   0xe   :  { %v88_v1 = vunpack.c.l.b16 %v78_v0  ;;  %v74_v5 = vld [vmem:[%s378_s0] sm:$0xff]  ;;  %vm92_vm1 = vcmask 195584   ;;  %v222_v7 = vld [vmem:[#allocation4 + $0x8] sm:$0xff]  ;;  %v221_v8 = vld [vmem:[#allocation4] sm:$0xff]  ;;  %vm135_vm2 = vcmask 261120  }
   0xf   :  { %v75_v6 = vpack.c.bf16 %v74_v5, %v74_v5  ;;  %145 = vmatpush.bf16.msra.mxu1 %v222_v7  ;;  %v230_v9 = vld [vmem:[%s380_s2] ss:$0 sm:$0xff]  ;;  %v224_v15 = vld [vmem:[#allocation6 + $0x8] sm:$0xff] }
  0x10   :  { %v90_v2 = vpack.c.b16 %v88_v1, %v88_v1  ;;  %183 = vmatpush.bf16.msra.mxu2 %v224_v15  ;;  %v223_v16 = vld [vmem:[#allocation6] sm:$0xff] }
  0x11   :  { %v231_v17 = vld [vmem:[%s382_s4] ss:$0 sm:$0xff] }
  0x12   :  { %v98_v3 = vsel %vm96_vm0, %v90_v2, 0  ;;  %v232_v23 = vld [vmem:[%s384_s6] ss:$0 sm:$0xff] }
  0x13   :  { %106 = vmatpush.bf16.msra.mxu0 %v98_v3  ;;  %146 = vmatpush.bf16.msra.mxu1 %v221_v8 }
  0x14   :  { %184 = vmatpush.bf16.msra.mxu2 %v223_v16 }
  0x17   :  { %107 = vmatpush.bf16.msra.mxu0 %v220_v4 }
  0x1a   :  { %201 = vmatmul.msk.bf16.vlgmr.msra.gmra.mxu0 %vm92_vm1, %v75_v6 }
  0x97   :  { %v109_v10 = vpop.f32.mrf.mxu0 }
  0x98   :  { %v110_v11 = vadd.f32 %v230_v9, %v109_v10 }
  0x9a   :  { %v113_v12 = vmax.f32 %v110_v11, 0.0 }
  0x9c   :  { %v114_v13 = vpack.c.bf16 %v113_v12, %v113_v12 }
  0x9e   :  { %210 = vmatmul.msk.bf16.vlgmr.msra.gmra.mxu1 %vm135_vm2, %v114_v13 }
  0x9f   :  { %v111_v14 = vpop.f32.mrf.mxu0 }
 0x11b   :  { %v148_v18 = vpop.f32.mrf.mxu1 }
 0x11c   :  { %v149_v19 = vadd.f32 %v231_v17, %v148_v18 }
 0x11e   :  { %v152_v20 = vmax.f32 %v149_v19, 0.0 }
 0x120   :  { %v153_v21 = vpack.c.bf16 %v152_v20, %v152_v20 }
 0x122   :  { %219 = vmatmul.msk.bf16.vlgmr.msra.gmra.mxu2 %vm135_vm2, %v153_v21 }
 0x123   :  { %v150_v22 = vpop.f32.mrf.mxu1 }
 0x1a5   :  { %v186_v24 = vpop.f32.mrf.mxu2 }
 0x1a6   :  { %v187_v25 = vadd.f32 %v232_v23, %v186_v24 }
 0x1a8   :  { %190 = vst [vmem:[%s385_s7] sm:$0xff] %v187_v25 }
 0x1ad   :  { %v188_v26 = vpop.f32.mrf.mxu2 }
 0x1ae   :  { %195 = vsyncpa [#allocation3], 1 }
 0x1af   :  { %196 = vsyncpa [#allocation5], 1 }

</bundles_post_ra>
